<compile_context>
chip_gen: v5e
topology: v5e:2x2
jax: 0.10.0
libtpu: 0.0.40
codegen_flags: <defaults>
</compile_context>

<pallas_src>
import jax
import jax.numpy as jnp
from jax.experimental import pallas as pl
from jax.experimental.pallas import tpu as pltpu

_LANE = 128
_NEG_PAD = -1e30  # padded logit columns -> effectively -inf for log_softmax


# --------------------------------- kernel ----------------------------------

def llnet_kernel(x_ref, w1_ref, b1_ref, w2_ref, b2_ref, w3_ref, b3_ref,
                 w4_ref, b4_ref, out_ref):
    # LL layers: the post-ReLU sign flip has been folded into the *next* layer's
    # weights at prep time, so each layer is just relu(x @ W + b).
    x = x_ref[...]
    h = jnp.maximum(
        jnp.dot(x, w1_ref[...], preferred_element_type=jnp.float32) + b1_ref[...], 0.0)
    h = jnp.maximum(
        jnp.dot(h, w2_ref[...], preferred_element_type=jnp.float32) + b2_ref[...], 0.0)
    h = jnp.maximum(
        jnp.dot(h, w3_ref[...], preferred_element_type=jnp.float32) + b3_ref[...], 0.0)
    # TODO(synk): nn.Dropout(0.5) is identity in eval mode; training-mode PRNG mask not implemented.

    # Final linear on lane-dense padded weights: padded columns produce -1e30 logits
    # (via the padded bias), contributing exp() == 0 to the log_softmax sum.
    logits = jnp.dot(h, w4_ref[...], preferred_element_type=jnp.float32) + b4_ref[...]
    m = jnp.max(logits, axis=1, keepdims=True)
    z = logits - m
    lse = jnp.log(jnp.sum(jnp.exp(z), axis=1, keepdims=True))
    out_ref[...] = (z - lse).astype(out_ref.dtype)


# -------------------------------- wrapper -----------------------------------

def _sign_row(out_features):
    half = out_features // 2
    return jnp.concatenate(
        [jnp.ones((half,), jnp.float32), -jnp.ones((half,), jnp.float32)])


def _prepare_params(params):
    """Fold each LL layer's output sign into the next layer's weights and pad the
    final linear to a lane-dense (multiple of 128) output width."""
    (w1, b1), (w2, b2), (w3, b3), (w4, b4) = params
    s1 = _sign_row(w1.shape[1])
    s2 = _sign_row(w2.shape[1])
    s3 = _sign_row(w3.shape[1])
    w2f = s1[:, None] * w2
    w3f = s2[:, None] * w3
    w4f = s3[:, None] * w4

    n_out = w4.shape[1]
    n_pad = ((n_out + _LANE - 1) // _LANE) * _LANE
    w4p = jnp.pad(w4f, ((0, 0), (0, n_pad - n_out)))
    b4p = jnp.concatenate(
        [b4, jnp.full((1, n_pad - n_out), _NEG_PAD, jnp.float32)], axis=1)
    return (w1, b1, w2f, b2, w3f, b3, w4p, b4p), n_out, n_pad


def llnet_forward(x, params, *, block_b=256):
    weight_args, n_out, n_pad = _prepare_params(params)

    B, n_in = x.shape
    # Batch tile: multiple of 8 sublanes, capped so double-buffered tiles stay tiny
    # relative to scoped VMEM on every generation (v7x included).
    tb = min(block_b, ((B + 7) // 8) * 8)
    b_pad = ((B + tb - 1) // tb) * tb
    if b_pad != B:
        x = jnp.pad(x, ((0, b_pad - B), (0, 0)))

    vmem = pltpu.MemorySpace.VMEM

    def batch_map(i):
        return (i, 0)

    def resident_map(i):
        return (0, 0)

    in_specs = [pl.BlockSpec((tb, n_in), batch_map, memory_space=vmem)]
    in_specs += [pl.BlockSpec(w.shape, resident_map, memory_space=vmem)
                 for w in weight_args]

    out = pl.pallas_call(
        llnet_kernel,
        out_shape=jax.ShapeDtypeStruct((b_pad, n_pad), jnp.float32),
        grid=(pl.cdiv(b_pad, tb),),
        in_specs=in_specs,
        out_specs=pl.BlockSpec((tb, n_pad), batch_map, memory_space=vmem),
        compiler_params=pltpu.CompilerParams(
            dimension_semantics=("parallel",)),
    )(x, *weight_args)
    return out[:B, :n_out]


# ------------- deterministic parameter construction (mirrors LLLayer.__init__) -------------

def make_ll_layer_params(key, in_f, out_f):
    assert out_f % 2 == 0
    half = out_f // 2
    # orthogonal init on the first half of the weight rows, second half = -first half, bias = 0
    w_top = jax.nn.initializers.orthogonal()(key, (half, in_f), jnp.float32)  # [half, in]
    w_pt = jnp.concatenate([w_top, -w_top], axis=0)                           # [out, in] (PyTorch layout)
    return w_pt.T, jnp.zeros((1, out_f), jnp.float32)                         # pass [in, out]


def make_linear_params(key, in_f, out_f):
    k1, k2 = jax.random.split(key)
    bound = 1.0 / float(jnp.sqrt(jnp.float32(in_f)))
    w_pt = jax.random.uniform(k1, (out_f, in_f), jnp.float32, -bound, bound)  # [out, in]
    b = jax.random.uniform(k2, (1, out_f), jnp.float32, -bound, bound)
    return w_pt.T, b


def _reference_forward(x, params):
    (w1, b1), (w2, b2), (w3, b3), (w4, b4) = params

    def ll(x, w, b):
        a = jnp.maximum(x @ w + b, 0.0)
        half = w.shape[1] // 2
        return jnp.concatenate([a[:, :half], -a[:, half:]], axis=1)

    h = ll(ll(ll(x, w1, b1), w2, b2), w3, b3)
    logits = h @ w4 + b4
    return jax.nn.log_softmax(logits, axis=1)


if __name__ == "__main__":
    key = jax.random.PRNGKey(0)
    B, n_in, n_out = 8, 32, 10
    hidden = (64, 64, 64)

    kx, k1, k2, k3, k4 = jax.random.split(key, 5)
    x = jax.random.normal(kx, (B, n_in), jnp.float32)

    params = [
        make_ll_layer_params(k1, n_in, hidden[0]),
        make_ll_layer_params(k2, hidden[0], hidden[1]),
        make_ll_layer_params(k3, hidden[1], hidden[2]),
        make_linear_params(k4, hidden[2], n_out),
    ]

    out = llnet_forward(x, params)
    out = jax.block_until_ready(out)

    ref = _reference_forward(x, params)
    assert out.shape == (B, n_out)
    assert jnp.allclose(out, ref, atol=1e-4, rtol=1e-4)

    print("KERNEL_OK")
</pallas_src>

<mosaic_0001>
module attributes {stable_mosaic.version = 11 : i64} {
  func.func @llnet_kernel(%arg0: i32, %arg1: memref<8x32xf32, #tpu.memory_space<vmem>>, %arg2: memref<32x64xf32, #tpu.memory_space<vmem>>, %arg3: memref<1x64xf32, #tpu.memory_space<vmem>>, %arg4: memref<64x64xf32, #tpu.memory_space<vmem>>, %arg5: memref<1x64xf32, #tpu.memory_space<vmem>>, %arg6: memref<64x64xf32, #tpu.memory_space<vmem>>, %arg7: memref<1x64xf32, #tpu.memory_space<vmem>>, %arg8: memref<64x128xf32, #tpu.memory_space<vmem>>, %arg9: memref<1x128xf32, #tpu.memory_space<vmem>>, %arg10: memref<8x128xf32, #tpu.memory_space<vmem>>) attributes {dimension_semantics = [#tpu.dimension_semantics<parallel>], iteration_bounds = array<i64: 1>, scalar_prefetch = 0 : i64, scratch_operands = 0 : i64, tpu.core_type = #tpu.core_type<tc>, window_params = [{transform_indices = @transform_0, window_bounds = array<i64: 8, 32>}, {pipeline_mode = #tpu.pipeline_mode<synchronous>, transform_indices = @transform_1, window_bounds = array<i64: 32, 64>}, {pipeline_mode = #tpu.pipeline_mode<synchronous>, transform_indices = @transform_2, window_bounds = array<i64: 1, 64>}, {pipeline_mode = #tpu.pipeline_mode<synchronous>, transform_indices = @transform_3, window_bounds = array<i64: 64, 64>}, {pipeline_mode = #tpu.pipeline_mode<synchronous>, transform_indices = @transform_4, window_bounds = array<i64: 1, 64>}, {pipeline_mode = #tpu.pipeline_mode<synchronous>, transform_indices = @transform_5, window_bounds = array<i64: 64, 64>}, {pipeline_mode = #tpu.pipeline_mode<synchronous>, transform_indices = @transform_6, window_bounds = array<i64: 1, 64>}, {pipeline_mode = #tpu.pipeline_mode<synchronous>, transform_indices = @transform_7, window_bounds = array<i64: 64, 128>}, {pipeline_mode = #tpu.pipeline_mode<synchronous>, transform_indices = @transform_8, window_bounds = array<i64: 1, 128>}, {transform_indices = @transform_9, window_bounds = array<i64: 8, 128>}]} {
    %c0 = arith.constant 0 : index
    %c0_0 = arith.constant 0 : index
    %0 = vector.load %arg1[%c0, %c0_0] : memref<8x32xf32, #tpu.memory_space<vmem>>, vector<8x32xf32>
    %c0_1 = arith.constant 0 : index
    %c0_2 = arith.constant 0 : index
    %1 = vector.load %arg2[%c0_1, %c0_2] : memref<32x64xf32, #tpu.memory_space<vmem>>, vector<32x64xf32>
    %cst = arith.constant dense<0.000000e+00> : vector<8x64xf32>
    %2 = tpu.matmul %0, %1, %cst {dimension_numbers = #tpu.dot_dimension_numbers<[1], [0], [0], [1], [0, 0, 1, 1], [], []>} : vector<8x32xf32>, vector<32x64xf32>, vector<8x64xf32> -> vector<8x64xf32>
    %c0_3 = arith.constant 0 : index
    %c0_4 = arith.constant 0 : index
    %3 = vector.load %arg3[%c0_3, %c0_4] : memref<1x64xf32, #tpu.memory_space<vmem>>, vector<1x64xf32>
    %4 = vector.broadcast %3 : vector<1x64xf32> to vector<8x64xf32>
    %5 = arith.addf %2, %4 : vector<8x64xf32>
    %cst_5 = arith.constant 0.000000e+00 : f32
    %6 = vector.broadcast %cst_5 : f32 to vector<8x64xf32>
    %7 = arith.maximumf %5, %6 : vector<8x64xf32>
    %c0_6 = arith.constant 0 : index
    %c0_7 = arith.constant 0 : index
    %8 = vector.load %arg4[%c0_6, %c0_7] : memref<64x64xf32, #tpu.memory_space<vmem>>, vector<64x64xf32>
    %cst_8 = arith.constant dense<0.000000e+00> : vector<8x64xf32>
    %9 = tpu.matmul %7, %8, %cst_8 {dimension_numbers = #tpu.dot_dimension_numbers<[1], [0], [0], [1], [0, 0, 1, 1], [], []>} : vector<8x64xf32>, vector<64x64xf32>, vector<8x64xf32> -> vector<8x64xf32>
    %c0_9 = arith.constant 0 : index
    %c0_10 = arith.constant 0 : index
    %10 = vector.load %arg5[%c0_9, %c0_10] : memref<1x64xf32, #tpu.memory_space<vmem>>, vector<1x64xf32>
    %11 = vector.broadcast %10 : vector<1x64xf32> to vector<8x64xf32>
    %12 = arith.addf %9, %11 : vector<8x64xf32>
    %cst_11 = arith.constant 0.000000e+00 : f32
    %13 = vector.broadcast %cst_11 : f32 to vector<8x64xf32>
    %14 = arith.maximumf %12, %13 : vector<8x64xf32>
    %c0_12 = arith.constant 0 : index
    %c0_13 = arith.constant 0 : index
    %15 = vector.load %arg6[%c0_12, %c0_13] : memref<64x64xf32, #tpu.memory_space<vmem>>, vector<64x64xf32>
    %cst_14 = arith.constant dense<0.000000e+00> : vector<8x64xf32>
    %16 = tpu.matmul %14, %15, %cst_14 {dimension_numbers = #tpu.dot_dimension_numbers<[1], [0], [0], [1], [0, 0, 1, 1], [], []>} : vector<8x64xf32>, vector<64x64xf32>, vector<8x64xf32> -> vector<8x64xf32>
    %c0_15 = arith.constant 0 : index
    %c0_16 = arith.constant 0 : index
    %17 = vector.load %arg7[%c0_15, %c0_16] : memref<1x64xf32, #tpu.memory_space<vmem>>, vector<1x64xf32>
    %18 = vector.broadcast %17 : vector<1x64xf32> to vector<8x64xf32>
    %19 = arith.addf %16, %18 : vector<8x64xf32>
    %cst_17 = arith.constant 0.000000e+00 : f32
    %20 = vector.broadcast %cst_17 : f32 to vector<8x64xf32>
    %21 = arith.maximumf %19, %20 : vector<8x64xf32>
    %c0_18 = arith.constant 0 : index
    %c0_19 = arith.constant 0 : index
    %22 = vector.load %arg8[%c0_18, %c0_19] : memref<64x128xf32, #tpu.memory_space<vmem>>, vector<64x128xf32>
    %cst_20 = arith.constant dense<0.000000e+00> : vector<8x128xf32>
    %23 = tpu.matmul %21, %22, %cst_20 {dimension_numbers = #tpu.dot_dimension_numbers<[1], [0], [0], [1], [0, 0, 1, 1], [], []>} : vector<8x64xf32>, vector<64x128xf32>, vector<8x128xf32> -> vector<8x128xf32>
    %c0_21 = arith.constant 0 : index
    %c0_22 = arith.constant 0 : index
    %24 = vector.load %arg9[%c0_21, %c0_22] : memref<1x128xf32, #tpu.memory_space<vmem>>, vector<1x128xf32>
    %25 = vector.broadcast %24 : vector<1x128xf32> to vector<8x128xf32>
    %26 = arith.addf %23, %25 : vector<8x128xf32>
    %cst_23 = arith.constant dense<0xFF800000> : vector<8xf32>
    %27 = vector.multi_reduction <maximumf>, %26, %cst_23 [1] : vector<8x128xf32> to vector<8xf32>
    %28 = vector.shape_cast %27 : vector<8xf32> to vector<8x1xf32>
    %29 = vector.broadcast %28 : vector<8x1xf32> to vector<8x128xf32>
    %30 = arith.subf %26, %29 : vector<8x128xf32>
    %31 = math.exp %30 : vector<8x128xf32>
    %cst_24 = arith.constant dense<0.000000e+00> : vector<8xf32>
    %32 = vector.multi_reduction <add>, %31, %cst_24 [1] : vector<8x128xf32> to vector<8xf32>
    %33 = vector.shape_cast %32 : vector<8xf32> to vector<8x1xf32>
    %34 = math.log %33 : vector<8x1xf32>
    %35 = vector.broadcast %34 : vector<8x1xf32> to vector<8x128xf32>
    %36 = arith.subf %30, %35 : vector<8x128xf32>
    %c0_25 = arith.constant 0 : index
    %c0_26 = arith.constant 0 : index
    %37 = vector.load %arg10[%c0_25, %c0_26] : memref<8x128xf32, #tpu.memory_space<vmem>>, vector<8x128xf32>
    tpu.vector_store %arg10[%c0_25, %c0_26], %36 {strides = array<i32>} : memref<8x128xf32, #tpu.memory_space<vmem>>, vector<8x128xf32>,
    return
  }
  func.func @transform_0(%arg0: i32) -> (i32, i32) {
    %c0_i32 = arith.constant 0 : i32
    %c0_i32_0 = arith.constant 0 : i32
    return %arg0, %c0_i32 : i32, i32
  }
  func.func @transform_1(%arg0: i32) -> (i32, i32) {
    %c0_i32 = arith.constant 0 : i32
    %c0_i32_0 = arith.constant 0 : i32
    %c0_i32_1 = arith.constant 0 : i32
    return %c0_i32, %c0_i32_0 : i32, i32
  }
  func.func @transform_2(%arg0: i32) -> (i32, i32) {
    %c0_i32 = arith.constant 0 : i32
    %c0_i32_0 = arith.constant 0 : i32
    %c0_i32_1 = arith.constant 0 : i32
    return %c0_i32, %c0_i32_0 : i32, i32
  }
  func.func @transform_3(%arg0: i32) -> (i32, i32) {
    %c0_i32 = arith.constant 0 : i32
    %c0_i32_0 = arith.constant 0 : i32
    %c0_i32_1 = arith.constant 0 : i32
    return %c0_i32, %c0_i32_0 : i32, i32
  }
  func.func @transform_4(%arg0: i32) -> (i32, i32) {
    %c0_i32 = arith.constant 0 : i32
    %c0_i32_0 = arith.constant 0 : i32
    %c0_i32_1 = arith.constant 0 : i32
    return %c0_i32, %c0_i32_0 : i32, i32
  }
  func.func @transform_5(%arg0: i32) -> (i32, i32) {
    %c0_i32 = arith.constant 0 : i32
    %c0_i32_0 = arith.constant 0 : i32
    %c0_i32_1 = arith.constant 0 : i32
    return %c0_i32, %c0_i32_0 : i32, i32
  }
  func.func @transform_6(%arg0: i32) -> (i32, i32) {
    %c0_i32 = arith.constant 0 : i32
    %c0_i32_0 = arith.constant 0 : i32
    %c0_i32_1 = arith.constant 0 : i32
    return %c0_i32, %c0_i32_0 : i32, i32
  }
  func.func @transform_7(%arg0: i32) -> (i32, i32) {
    %c0_i32 = arith.constant 0 : i32
    %c0_i32_0 = arith.constant 0 : i32
    %c0_i32_1 = arith.constant 0 : i32
    return %c0_i32, %c0_i32_0 : i32, i32
  }
  func.func @transform_8(%arg0: i32) -> (i32, i32) {
    %c0_i32 = arith.constant 0 : i32
    %c0_i32_0 = arith.constant 0 : i32
    %c0_i32_1 = arith.constant 0 : i32
    return %c0_i32, %c0_i32_0 : i32, i32
  }
  func.func @transform_9(%arg0: i32) -> (i32, i32) {
    %c0_i32 = arith.constant 0 : i32
    %c0_i32_0 = arith.constant 0 : i32
    return %arg0, %c0_i32 : i32, i32
  }
}

</mosaic_0001>

<bundles_post_ra>
// kernel: tpu_custom_call.1
= control target key start
LH: loop header
LB: loop body
LE: loop exit
PB: predicated region body
PF: predicated region fallthrough
CT: control target
= control target key end

     0   :  { %14 = vsyncpa [#allocation3], 0  ;;  %s544_s0 = inlined_call_operand.hbm [shape: f32[8,32], index: 0, kind: input, shape index: {}]   ;;  %s545_s1 = inlined_call_operand.hbm [shape: f32[32,64], index: 1, kind: input, shape index: {}]   ;;  %s546_s2 = inlined_call_operand.vmem [shape: f32[1,64], index: 2, kind: input, shape index: {}]   ;;  %s547_s3 = inlined_call_operand.hbm [shape: f32[64,64], index: 3, kind: input, shape index: {}]   ;;  %s548_s4 = inlined_call_operand.vmem [shape: f32[1,64], index: 4, kind: input, shape index: {}]   ;;  %s549_s5 = inlined_call_operand.hbm [shape: f32[64,64], index: 5, kind: input, shape index: {}]   ;;  %s550_s6 = inlined_call_operand.vmem [shape: f32[1,64], index: 6, kind: input, shape index: {}]   ;;  %s551_s7 = inlined_call_operand.hbm [shape: f32[64,128], index: 7, kind: input, shape index: {}]   ;;  %s552_s8 = inlined_call_operand.vmem [shape: f32[1,128], index: 8, kind: input, shape index: {}]   ;;  %s553_s9 = inlined_call_operand.hbm [shape: f32[8,128], index: 9, kind: output, shape index: {}]  }
   0x1   :  { %15 = vsyncpa [#allocation6], 0 }
   0x2   :  { %16 = vsyncpa [#allocation9], 0  ;;  %s33_s11 = sshll.u32 %s545_s1, 4  ;;  %s34_s11 = int_to_ptr.hbm [resolvable:$true] %s33_s11 }
   0x3   :  { %17 = vsyncpa [#allocation4], 0  ;;  %s453_s12 = smov [#allocation5]   ;;  %s63_s16 = sshll.u32 %s549_s5, 4  ;;  %s64_s16 = int_to_ptr.hbm [resolvable:$true] %s63_s16 }
   0x4   :  { %s35_s13 = sshll.u32 %s453_s12, 4  ;;  %s454_s17 = smov 128   ;;  %s36_s13 = int_to_ptr.vmem [resolvable:$true] %s35_s13 }
   0x5   :  { %s455_s18 = smov 8   ;;  %s456_s19 = smov [#allocation8]  }
   0x6   :  { %41 = dma.hbm_to_vmem [thread:$0]  %s34_s11, 512, %s36_s13, [#allocation6], %s454_s17, %s454_s17, %s455_s18  }
   0x7   :  { %s65_s20 = sshll.u32 %s456_s19, 4  ;;  %s23_s23 = sshll.u32 %s544_s0, 4  ;;  %s66_s20 = int_to_ptr.vmem [resolvable:$true] %s65_s20  ;;  %s24_s23 = int_to_ptr.hbm [resolvable:$true] %s23_s23 }
   0x8   :  { %71 = dma.hbm_to_vmem [thread:$0]  %s64_s16, 1024, %s66_s20, [#allocation9], %s454_s17, %s454_s17, %s455_s18  }
   0x9   :  { %s48_s25 = sshll.u32 %s547_s3, 4  ;;  %s457_s26 = smov [#allocation2]   ;;  %s49_s25 = int_to_ptr.hbm [resolvable:$true] %s48_s25 }
   0xa   :  { %s25_s27 = sshll.u32 %s457_s26, 4  ;;  %s458_s5 = smov [#allocation7]   ;;  %s26_s27 = int_to_ptr.vmem [resolvable:$true] %s25_s27 }
   0xb   :  { %28 = dma.hbm_to_vmem [thread:$0]  %s24_s23, 128, %s26_s27, [#allocation3]  }
   0xc   :  { %s50_s28 = sshll.u32 %s458_s5, 4  ;;  %s78_s10 = sshll.u32 %s551_s7, 4  ;;  %s51_s28 = int_to_ptr.vmem [resolvable:$true] %s50_s28  ;;  %s79_s10 = int_to_ptr.hbm [resolvable:$true] %s78_s10 }
   0xd   :  { %56 = dma.hbm_to_vmem [thread:$0]  %s49_s25, 1024, %s51_s28, [#allocation6], %s454_s17, %s454_s17, %s455_s18  }
   0xe   :  { %s459_s0 = smov [#allocation10]  }
   0xf   :  { %s80_s11 = sshll.u32 %s459_s0, 4  ;;  %s81_s11 = int_to_ptr.vmem [resolvable:$true] %s80_s11 }
  0x10   :  { %86 = dma.hbm_to_vmem [thread:$0]  %s79_s10, 1024, %s81_s11, [#allocation9], %s454_s17, %s454_s17, %s455_s18  }
  0x11   :  { %445 = dma.done.wait [#allocation3], 128  }
  0x12   :  { %446 = vsyncadd [#allocation3], 4294967168 }
  0x13   :  { %447 = dma.done.wait [#allocation6], 1536  }
  0x14   :  { %448 = vsyncadd [#allocation6], 4294965760 }
  0x15   :  { %449 = dma.done.wait [#allocation9], 2048  }
  0x16   :  { %450 = vsyncadd [#allocation9], 4294965248  ;;  %v113_v0 = vld [vmem:[#allocation5 + $0x18] sm:$0xff]  ;;  %v112_v1 = vld [vmem:[#allocation5 + $0x10] sm:$0xff]  ;;  %vm118_vm0 = vcmask 261120   ;;  %vm155_vm1 = vcmask 523264  }
  0x17   :  { %134 = vmatpush.msra.mxu0 %v113_v0  ;;  %v150_v2 = vld [vmem:[#allocation7 + $0x38] sm:$0xff]  ;;  %v111_v3 = vld [vmem:[#allocation5 + $0x8] sm:$0xff]  ;;  %v149_v4 = vld [vmem:[#allocation7 + $0x30] sm:$0xff]  ;;  %s269_s19 = sshll.u32 %s553_s9, 4  ;;  %s270_s19 = int_to_ptr.hbm [resolvable:$true] %s269_s19 }
  0x18   :  { %167 = vmatpush.msra.mxu1 %v150_v2  ;;  %v110_v5 = vld [vmem:[#allocation5] sm:$0xff]  ;;  %v148_v6 = vld [vmem:[#allocation7 + $0x28] sm:$0xff]  ;;  %v109_v7 = vld [vmem:[#allocation2] sm:$0xff] }
  0x19   :  { %135 = vmatpush.msra.mxu0 %v112_v1  ;;  %v147_v8 = vld [vmem:[#allocation7 + $0x20] sm:$0xff]  ;;  %v146_v9 = vld [vmem:[#allocation7 + $0x18] sm:$0xff]  ;;  %v145_v10 = vld [vmem:[#allocation7 + $0x10] sm:$0xff] }
  0x1a   :  { %168 = vmatpush.msra.mxu1 %v149_v4  ;;  %v144_v11 = vld [vmem:[#allocation7 + $0x8] sm:$0xff]  ;;  %v143_v12 = vld [vmem:[#allocation7] sm:$0xff]  ;;  %v187_v13 = vld [vmem:[#allocation8 + $0x38] sm:$0xff] }
  0x1b   :  { %136 = vmatpush.msra.mxu0 %v111_v3  ;;  %v186_v14 = vld [vmem:[#allocation8 + $0x30] sm:$0xff]  ;;  %203 = vmatpush.msra.mxu2 %v187_v13  ;;  %v185_v15 = vld [vmem:[#allocation8 + $0x28] sm:$0xff]  ;;  %v184_v16 = vld [vmem:[#allocation8 + $0x20] sm:$0xff] }
  0x1c   :  { %169 = vmatpush.msra.mxu1 %v148_v6  ;;  %v183_v17 = vld [vmem:[#allocation8 + $0x18] sm:$0xff]  ;;  %v182_v22 = vld [vmem:[#allocation8 + $0x10] sm:$0xff]  ;;  %v181_v23 = vld [vmem:[#allocation8 + $0x8] sm:$0xff] }
  0x1d   :  { %137 = vmatpush.msra.mxu0 %v110_v5  ;;  %204 = vmatpush.msra.mxu2 %v186_v14  ;;  %v293_v18 = vld [vmem:[%s546_s2] ss:$0 sm:$0xff]  ;;  %v180_v24 = vld [vmem:[#allocation8] sm:$0xff]  ;;  %v222_v26 = vld [vmem:[#allocation10 + $0x30] sm:$0xff] }
  0x1e   :  { %281 = vmatmul.msk.f32.vlgmr.msra.gmra.mxu0 %vm118_vm0, %v109_v7  ;;  %170 = vmatpush.msra.mxu1 %v147_v8  ;;  %v223_v25 = vld [vmem:[#allocation10 + $0x38] sm:$0xff]  ;;  %v221_v27 = vld [vmem:[#allocation10 + $0x28] sm:$0xff]  ;;  %v220_v28 = vld [vmem:[#allocation10 + $0x20] sm:$0xff] }
  0x1f   :  { %205 = vmatpush.msra.mxu2 %v185_v15  ;;  %239 = vmatpush.msra.mxu3 %v223_v25  ;;  %v219_v29 = vld [vmem:[#allocation10 + $0x18] sm:$0xff]  ;;  %v218_v34 = vld [vmem:[#allocation10 + $0x10] sm:$0xff]  ;;  %v217_v35 = vld [vmem:[#allocation10 + $0x8] sm:$0xff] }
  0x20   :  { %171 = vmatpush.msra.mxu1 %v146_v9  ;;  %v294_v30 = vld [vmem:[%s548_s4] ss:$0 sm:$0xff]  ;;  %v216_v36 = vld [vmem:[#allocation10] sm:$0xff] }
  0x21   :  { %206 = vmatpush.msra.mxu2 %v184_v16  ;;  %240 = vmatpush.msra.mxu3 %v222_v26  ;;  %v295_v37 = vld [vmem:[%s550_s6] ss:$0 sm:$0xff]  ;;  %s460_s6 = smov [#allocation11]  }
  0x22   :  { %172 = vmatpush.msra.mxu1 %v145_v10  ;;  %v296_v41 = vld [vmem:[%s552_s8] ss:$0 sm:$0xff]  ;;  %s267_s16 = sshll.u32 %s460_s6, 4  ;;  %s268_s16 = int_to_ptr.vmem [resolvable:$true] %s267_s16 }
  0x23   :  { %207 = vmatpush.msra.mxu2 %v183_v17  ;;  %241 = vmatpush.msra.mxu3 %v221_v27 }
  0x24   :  { %173 = vmatpush.msra.mxu1 %v144_v11 }
  0x25   :  { %208 = vmatpush.msra.mxu2 %v182_v22  ;;  %242 = vmatpush.msra.mxu3 %v220_v28 }
  0x26   :  { %174 = vmatpush.msra.mxu1 %v143_v12 }
  0x27   :  { %209 = vmatpush.msra.mxu2 %v181_v23  ;;  %243 = vmatpush.msra.mxu3 %v219_v29 }
  0x29   :  { %210 = vmatpush.msra.mxu2 %v180_v24  ;;  %244 = vmatpush.msra.mxu3 %v218_v34 }
  0x2b   :  { %245 = vmatpush.msra.mxu3 %v217_v35 }
  0x2d   :  { %246 = vmatpush.msra.mxu3 %v216_v36 }
  0x9b   :  { %v139_v19 = vpop.f32.mrf.mxu0 }
  0x9c   :  { %v140_v20 = vadd.f32 %v293_v18, %v139_v19 }
  0x9e   :  { %v142_v21 = vmax.f32 %v140_v20, 0.0 }
  0xa0   :  { %282 = vmatmul.msk.f32.vlgmr.msra.gmra.mxu1 %vm155_vm1, %v142_v21 }
 0x11d   :  { %v176_v31 = vpop.f32.mrf.mxu1 }
 0x11e   :  { %v177_v32 = vadd.f32 %v294_v30, %v176_v31 }
 0x120   :  { %v179_v33 = vmax.f32 %v177_v32, 0.0 }
 0x122   :  { %283 = vmatmul.msk.f32.vlgmr.msra.gmra.mxu2 %vm155_vm1, %v179_v33 }
 0x1a5   :  { %v212_v38 = vpop.f32.mrf.mxu2 }
 0x1a6   :  { %v213_v39 = vadd.f32 %v295_v37, %v212_v38 }
 0x1a8   :  { %v215_v40 = vmax.f32 %v213_v39, 0.0 }
 0x1aa   :  { %284 = vmatmul.msk.f32.vlgmr.msra.gmra.mxu3 %vm155_vm1, %v215_v40 }
 0x22d   :  { %v248_v42 = vpop.f32.mrf.mxu3 }
 0x22e   :  { %v249_v43 = vadd.f32 %v296_v41, %v248_v42 }
 0x230   :  { %251 = vmax.xlane.f32.xlu0 %v249_v43 }
 0x2a3   :  { %v252_v44 = vpop.xlane.xlu0 %251 }
 0x2a4   :  { %v253_v45 = vsub.f32 %v249_v43, %v252_v44 }
 0x2a6   :  { %v254_v46 = vmul.f32 1.442695, %v253_v45 }
 0x2a8   :  { %297 = vpow2.f32 %v254_v46 }
 0x2ae   :  { %v298_v47 = vpop.eup %297 }
 0x2af   :  { %256 = vadd.xlane.f32.xlu0 %v298_v47 }
 0x322   :  { %v257_v48 = vpop.xlane.xlu0 %256 }
 0x323   :  { %299 = vlog2.f32 %v257_v48 }
 0x329   :  { %v300_v49 = vpop.eup %299 }
 0x32a   :  { %v259_v50 = vmul.f32 0.6931472, %v300_v49 }
 0x32c   :  { %v260_v51 = vsub.f32 %v253_v45, %v259_v50 }
 0x32e   :  { %261 = vst [vmem:[#allocation11] sm:$0xff] %v260_v51 }
 0x32f   :  { %272 = dma.vmem_to_hbm [thread:$0]  %s268_s16, 128, %s270_s19, [#allocation4]  }
 0x330   :  { %451 = dma.done.wait [#allocation4], 128  }
 0x331   :  { %452 = vsyncadd [#allocation4], 4294967168 }
 0x332   :  { %277 = vsyncpa [#allocation3], 1 }
 0x333   :  { %278 = vsyncpa [#allocation6], 1 }
 0x334   :  { %279 = vsyncpa [#allocation9], 1 }
 0x335   :  { %280 = vsyncpa [#allocation4], 1 }

</bundles_post_ra>
